<compile_context>
chip_gen: v6e
topology: v6e:2x2x1
jax: 0.10.0
libtpu: 0.0.40
codegen_flags: <defaults>
</compile_context>

<pallas_src>
import functools

import jax
import jax.numpy as jnp
import numpy as np
from jax.experimental import pallas as pl
from jax.experimental.pallas import tpu as pltpu

NUM_BASIS = 8
TARGET_BLOCK_ELEMS = 512 * 1024          # ~2 MiB of f32 per pipeline buffer
LANE_CANDIDATES = (1024, 512, 256, 128)  # lane-dense slab widths (mult. of 128)


def _round_up(x: int, m: int) -> int:
    return (x + m - 1) // m * m


def _choose_block_rows(rows: int, lane_width: int) -> int:
    """Pick a sublane block size: <= ~2 MiB, multiple of 8, >=2 grid steps when possible."""
    if rows <= 8:
        return rows                                   # full-dim block (allowed)
    max_rows = max(8, (TARGET_BLOCK_ELEMS // lane_width) // 8 * 8)
    br = min(max_rows, (rows // 8) * 8)               # multiple of 8, <= rows
    if rows >= 16:
        # Guarantee at least 2 grid steps so v7x's 2nd TensorCore gets work.
        br = min(br, max(8, _round_up(-(-rows // 2), 8)))
    return br


def _monotonic_basis_kernel(hw_ref, st_ref, c_ref, x_ref, o_ref, *,
                            num_basis: int, tanh_in_bf16: bool):
    """o = 0.5*sum(w) + sum_k (w_k/2) * tanh(half_scale*x - st_k).

    Mathematically identical to sum_k w_k * sigmoid(num_basis*(x - t_k)) with
    hw_k = w_k/2, st_k = (num_basis/2)*t_k, c = [num_basis/2, sum_k(w_k)/2],
    but with half the transcendental (EUP) work.
    """
    x = x_ref[...].astype(jnp.float32)
    xs = x * c_ref[0]                                   # hoisted scale multiply
    # Accumulator starts at the 0.5*sum(w) constant (folds the final add).
    acc = jnp.full(xs.shape, c_ref[1], dtype=jnp.float32)
    if tanh_in_bf16:
        # v6e/v7x: EUP runs bf16 tanh at ~2x f32 rate; accumulate in f32.
        xs_b = xs.astype(jnp.bfloat16)
        for k in range(num_basis):
            t = jnp.tanh(xs_b - st_ref[k].astype(jnp.bfloat16))
            acc = acc + hw_ref[k] * t.astype(jnp.float32)
    else:
        for k in range(num_basis):
            acc = acc + hw_ref[k] * jnp.tanh(xs - st_ref[k])
    o_ref[...] = acc.astype(o_ref.dtype)


def monotonic_basis_forward(x, weight_logits, theta_raw,
                            num_basis: int = NUM_BASIS,
                            tanh_in_bf16: bool = False):
    """Pallas implementation of MonotonicBasis.forward for any input shape."""
    orig_shape = x.shape
    orig_dtype = x.dtype
    total = int(np.prod(orig_shape))

    # --- parameter glue (tiny, plain JAX), folded into kernel constants ---
    weights = jax.nn.softmax(weight_logits.astype(jnp.float32), axis=0)
    thetas = (jax.nn.sigmoid(theta_raw.astype(jnp.float32))
              * (1.0 + 10.0 / num_basis) - 5.0 / num_basis)
    half_scale = jnp.float32(0.5 * num_basis)
    hw = 0.5 * weights                                 # (num_basis,)
    st = half_scale * thetas                           # (num_basis,)
    consts = jnp.stack([half_scale, 0.5 * jnp.sum(weights)])  # (2,)

    # --- lane-dense (rows, lane_width) slab; avoid pad/slice passes if we can ---
    lane_width = next((lw for lw in LANE_CANDIDATES if total % lw == 0), 0)
    if lane_width:
        rows = total // lane_width
        x2d = x.reshape(rows, lane_width)              # free bitcast, no pad
        padded = False
    else:
        lane_width = 128
        rows = -(-total // lane_width)
        x2d = jnp.pad(x.reshape(-1),
                      (0, rows * lane_width - total)).reshape(rows, lane_width)
        padded = True

    block_rows = _choose_block_rows(rows, lane_width)
    grid = (pl.cdiv(rows, block_rows),)                # partial last block OK

    n_elems = rows * lane_width
    bytes_per_elem = x2d.dtype.itemsize + jnp.dtype(orig_dtype).itemsize
    cost = pl.CostEstimate(
        flops=(3 * num_basis + 2) * n_elems,
        transcendentals=num_basis * n_elems,
        bytes_accessed=bytes_per_elem * n_elems,
    )

    out2d = pl.pallas_call(
        functools.partial(_monotonic_basis_kernel, num_basis=num_basis,
                          tanh_in_bf16=tanh_in_bf16),
        out_shape=jax.ShapeDtypeStruct((rows, lane_width), orig_dtype),
        grid_spec=pltpu.PrefetchScalarGridSpec(
            num_scalar_prefetch=0,
            grid=grid,
            in_specs=[
                pl.BlockSpec(memory_space=pltpu.MemorySpace.SMEM),  # hw
                pl.BlockSpec(memory_space=pltpu.MemorySpace.SMEM),  # st
                pl.BlockSpec(memory_space=pltpu.MemorySpace.SMEM),  # consts
                pl.BlockSpec((block_rows, lane_width), lambda i: (i, 0)),
            ],
            out_specs=pl.BlockSpec((block_rows, lane_width), lambda i: (i, 0)),
        ),
        compiler_params=pltpu.CompilerParams(
            dimension_semantics=("parallel",)),
        cost_estimate=cost,
    )(hw, st, consts, x2d)

    if padded:
        return out2d.reshape(-1)[:total].reshape(orig_shape)
    return out2d.reshape(orig_shape)


def _reference(x, weight_logits, theta_raw, num_basis):
    weights = jax.nn.softmax(weight_logits, axis=0)
    thetas = (jax.nn.sigmoid(theta_raw) * (1.0 + 10.0 / num_basis)
              - 5.0 / num_basis)
    basis = jax.nn.sigmoid((x[..., None] - thetas) * num_basis)
    return jnp.sum(weights * basis, axis=-1)


if __name__ == "__main__":
    num_basis = NUM_BASIS

    # Deterministic parameter init matching MonotonicBasis.__init__
    weight_logits = jnp.zeros((num_basis,), dtype=jnp.float32)
    initial_thetas = jnp.array(
        [1.0 / (2 * num_basis) + i / num_basis for i in range(num_basis)],
        dtype=jnp.float32)
    p = (initial_thetas + 5.0 / num_basis) / (1.0 + 10.0 / num_basis)
    theta_raw = jnp.log(p) - jnp.log1p(-p)  # logit

    key = jax.random.PRNGKey(0)
    k0, k1 = jax.random.split(key)

    # Main test: NCHW-like shape whose element count divides the lane width
    # (no padding; the (rows, lane) reshape is a free bitcast).
    x = jax.random.uniform(k0, (2, 4, 16, 16), dtype=jnp.float32)
    out = jax.block_until_ready(
        monotonic_basis_forward(x, weight_logits, theta_raw, num_basis))
    ref = _reference(x, weight_logits, theta_raw, num_basis)
    np.testing.assert_allclose(np.asarray(out), np.asarray(ref),
                               rtol=1e-5, atol=1e-5)

    # Ragged shape: exercises the minimal-pad + partial-last-block path.
    x2 = jax.random.uniform(k1, (3, 5, 7, 11), dtype=jnp.float32)
    out2 = jax.block_until_ready(
        monotonic_basis_forward(x2, weight_logits, theta_raw, num_basis))
    ref2 = _reference(x2, weight_logits, theta_raw, num_basis)
    np.testing.assert_allclose(np.asarray(out2), np.asarray(ref2),
                               rtol=1e-5, atol=1e-5)

    print("KERNEL_OK")
</pallas_src>

<mosaic_0001>
module attributes {stable_mosaic.version = 11 : i64} {
  func.func @_monotonic_basis_kernel(%arg0: i32, %arg1: memref<8xf32, #tpu.memory_space<smem>>, %arg2: memref<8xf32, #tpu.memory_space<smem>>, %arg3: memref<2xf32, #tpu.memory_space<smem>>, %arg4: memref<2x1024xf32, #tpu.memory_space<vmem>>, %arg5: memref<2x1024xf32, #tpu.memory_space<vmem>>) attributes {dimension_semantics = [#tpu.dimension_semantics<parallel>], iteration_bounds = array<i64: 1>, scalar_prefetch = 0 : i64, scratch_operands = 0 : i64, tpu.core_type = #tpu.core_type<tc>, window_params = [{transform_indices = @transform_0, window_bounds = array<i64: 8>}, {transform_indices = @transform_1, window_bounds = array<i64: 8>}, {transform_indices = @transform_2, window_bounds = array<i64: 2>}, {transform_indices = @transform_3, window_bounds = array<i64: 2, 1024>}, {transform_indices = @transform_4, window_bounds = array<i64: 2, 1024>}]} {
    %c0 = arith.constant 0 : index
    %c0_0 = arith.constant 0 : index
    %0 = vector.load %arg4[%c0, %c0_0] : memref<2x1024xf32, #tpu.memory_space<vmem>>, vector<2x1024xf32>
    %c0_1 = arith.constant 0 : index
    %1 = memref.load %arg3[%c0_1] : memref<2xf32, #tpu.memory_space<smem>>
    %2 = vector.broadcast %1 : f32 to vector<2x1024xf32>
    %3 = arith.mulf %0, %2 : vector<2x1024xf32>
    %c1 = arith.constant 1 : index
    %4 = memref.load %arg3[%c1] : memref<2xf32, #tpu.memory_space<smem>>
    %5 = vector.broadcast %4 : f32 to vector<2x1024xf32>
    %c0_2 = arith.constant 0 : index
    %6 = memref.load %arg1[%c0_2] : memref<8xf32, #tpu.memory_space<smem>>
    %c0_3 = arith.constant 0 : index
    %7 = memref.load %arg2[%c0_3] : memref<8xf32, #tpu.memory_space<smem>>
    %8 = vector.broadcast %7 : f32 to vector<2x1024xf32>
    %9 = arith.subf %3, %8 : vector<2x1024xf32>
    %10 = math.tanh %9 : vector<2x1024xf32>
    %11 = vector.broadcast %6 : f32 to vector<2x1024xf32>
    %12 = arith.mulf %11, %10 : vector<2x1024xf32>
    %13 = arith.addf %5, %12 : vector<2x1024xf32>
    %c1_4 = arith.constant 1 : index
    %14 = memref.load %arg1[%c1_4] : memref<8xf32, #tpu.memory_space<smem>>
    %c1_5 = arith.constant 1 : index
    %15 = memref.load %arg2[%c1_5] : memref<8xf32, #tpu.memory_space<smem>>
    %16 = vector.broadcast %15 : f32 to vector<2x1024xf32>
    %17 = arith.subf %3, %16 : vector<2x1024xf32>
    %18 = math.tanh %17 : vector<2x1024xf32>
    %19 = vector.broadcast %14 : f32 to vector<2x1024xf32>
    %20 = arith.mulf %19, %18 : vector<2x1024xf32>
    %21 = arith.addf %13, %20 : vector<2x1024xf32>
    %c2 = arith.constant 2 : index
    %22 = memref.load %arg1[%c2] : memref<8xf32, #tpu.memory_space<smem>>
    %c2_6 = arith.constant 2 : index
    %23 = memref.load %arg2[%c2_6] : memref<8xf32, #tpu.memory_space<smem>>
    %24 = vector.broadcast %23 : f32 to vector<2x1024xf32>
    %25 = arith.subf %3, %24 : vector<2x1024xf32>
    %26 = math.tanh %25 : vector<2x1024xf32>
    %27 = vector.broadcast %22 : f32 to vector<2x1024xf32>
    %28 = arith.mulf %27, %26 : vector<2x1024xf32>
    %29 = arith.addf %21, %28 : vector<2x1024xf32>
    %c3 = arith.constant 3 : index
    %30 = memref.load %arg1[%c3] : memref<8xf32, #tpu.memory_space<smem>>
    %c3_7 = arith.constant 3 : index
    %31 = memref.load %arg2[%c3_7] : memref<8xf32, #tpu.memory_space<smem>>
    %32 = vector.broadcast %31 : f32 to vector<2x1024xf32>
    %33 = arith.subf %3, %32 : vector<2x1024xf32>
    %34 = math.tanh %33 : vector<2x1024xf32>
    %35 = vector.broadcast %30 : f32 to vector<2x1024xf32>
    %36 = arith.mulf %35, %34 : vector<2x1024xf32>
    %37 = arith.addf %29, %36 : vector<2x1024xf32>
    %c4 = arith.constant 4 : index
    %38 = memref.load %arg1[%c4] : memref<8xf32, #tpu.memory_space<smem>>
    %c4_8 = arith.constant 4 : index
    %39 = memref.load %arg2[%c4_8] : memref<8xf32, #tpu.memory_space<smem>>
    %40 = vector.broadcast %39 : f32 to vector<2x1024xf32>
    %41 = arith.subf %3, %40 : vector<2x1024xf32>
    %42 = math.tanh %41 : vector<2x1024xf32>
    %43 = vector.broadcast %38 : f32 to vector<2x1024xf32>
    %44 = arith.mulf %43, %42 : vector<2x1024xf32>
    %45 = arith.addf %37, %44 : vector<2x1024xf32>
    %c5 = arith.constant 5 : index
    %46 = memref.load %arg1[%c5] : memref<8xf32, #tpu.memory_space<smem>>
    %c5_9 = arith.constant 5 : index
    %47 = memref.load %arg2[%c5_9] : memref<8xf32, #tpu.memory_space<smem>>
    %48 = vector.broadcast %47 : f32 to vector<2x1024xf32>
    %49 = arith.subf %3, %48 : vector<2x1024xf32>
    %50 = math.tanh %49 : vector<2x1024xf32>
    %51 = vector.broadcast %46 : f32 to vector<2x1024xf32>
    %52 = arith.mulf %51, %50 : vector<2x1024xf32>
    %53 = arith.addf %45, %52 : vector<2x1024xf32>
    %c6 = arith.constant 6 : index
    %54 = memref.load %arg1[%c6] : memref<8xf32, #tpu.memory_space<smem>>
    %c6_10 = arith.constant 6 : index
    %55 = memref.load %arg2[%c6_10] : memref<8xf32, #tpu.memory_space<smem>>
    %56 = vector.broadcast %55 : f32 to vector<2x1024xf32>
    %57 = arith.subf %3, %56 : vector<2x1024xf32>
    %58 = math.tanh %57 : vector<2x1024xf32>
    %59 = vector.broadcast %54 : f32 to vector<2x1024xf32>
    %60 = arith.mulf %59, %58 : vector<2x1024xf32>
    %61 = arith.addf %53, %60 : vector<2x1024xf32>
    %c7 = arith.constant 7 : index
    %62 = memref.load %arg1[%c7] : memref<8xf32, #tpu.memory_space<smem>>
    %c7_11 = arith.constant 7 : index
    %63 = memref.load %arg2[%c7_11] : memref<8xf32, #tpu.memory_space<smem>>
    %64 = vector.broadcast %63 : f32 to vector<2x1024xf32>
    %65 = arith.subf %3, %64 : vector<2x1024xf32>
    %66 = math.tanh %65 : vector<2x1024xf32>
    %67 = vector.broadcast %62 : f32 to vector<2x1024xf32>
    %68 = arith.mulf %67, %66 : vector<2x1024xf32>
    %69 = arith.addf %61, %68 : vector<2x1024xf32>
    %c0_12 = arith.constant 0 : index
    %c0_13 = arith.constant 0 : index
    %70 = vector.load %arg5[%c0_12, %c0_13] : memref<2x1024xf32, #tpu.memory_space<vmem>>, vector<2x1024xf32>
    tpu.vector_store %arg5[%c0_12, %c0_13], %69 {strides = array<i32>} : memref<2x1024xf32, #tpu.memory_space<vmem>>, vector<2x1024xf32>,
    return
  }
  func.func @transform_0(%arg0: i32) -> i32 {
    %c0_i32 = arith.constant 0 : i32
    %c0_i32_0 = arith.constant 0 : i32
    return %c0_i32 : i32
  }
  func.func @transform_1(%arg0: i32) -> i32 {
    %c0_i32 = arith.constant 0 : i32
    %c0_i32_0 = arith.constant 0 : i32
    return %c0_i32 : i32
  }
  func.func @transform_2(%arg0: i32) -> i32 {
    %c0_i32 = arith.constant 0 : i32
    %c0_i32_0 = arith.constant 0 : i32
    return %c0_i32 : i32
  }
  func.func @transform_3(%arg0: i32) -> (i32, i32) {
    %c0_i32 = arith.constant 0 : i32
    %c0_i32_0 = arith.constant 0 : i32
    return %arg0, %c0_i32 : i32, i32
  }
  func.func @transform_4(%arg0: i32) -> (i32, i32) {
    %c0_i32 = arith.constant 0 : i32
    %c0_i32_0 = arith.constant 0 : i32
    return %arg0, %c0_i32 : i32, i32
  }
}

</mosaic_0001>

<bundles_post_ra>
// kernel: tpu_custom_call.1
= control target key start
LH: loop header
LB: loop body
LE: loop exit
PB: predicated region body
PF: predicated region fallthrough
CT: control target
= control target key end

     0   :  { %9 = vsyncpa [#allocation5], 0  ;;  %s395_s0 = inlined_call_operand.hbm [shape: f32[8], index: 0, kind: input, shape index: {}]   ;;  %s396_s1 = inlined_call_operand.vmem [shape: f32[8], index: 1, kind: input, shape index: {}]   ;;  %s397_s2 = inlined_call_operand.vmem [shape: f32[2], index: 2, kind: input, shape index: {}]   ;;  %s398_s3 = inlined_call_operand.hbm [shape: f32[2,1024], index: 3, kind: input, shape index: {}]   ;;  %s399_s4 = inlined_call_operand.hbm [shape: f32[2,1024], index: 4, kind: output, shape index: {}]  }
   0x1   :  { %10 = vsyncpa [#allocation6], 0 }
   0x2   :  { %11 = vsyncpa [#allocation9], 0 }
   0x3   :  { %12 = vsyncpa [#allocation3], 0 }
   0x4   :  { %13 = vsyncpa [#allocation4], 0  ;;  %s28_s17 = sshll.u32 %s396_s1, 4  ;;  %s323_s18 = smov [#allocation2]   ;;  %s29_s17 = int_to_ptr.vmem [resolvable:$true] %s28_s17 }
   0x5   :  { %21 = dma.hbm_to_smem %s395_s0, 16, %s323_s18, [#allocation5]  }
   0x6   :  { %s249_s21 = scalar_lea.vmem %s29_s17, 16  ;;  %p254_p1 = scmp.lt.s32.totalorder %s29_s17, %s29_s17 }
   0x7   :  { %p250_p0 = scmp.ne.s32.totalorder %s29_s17, %s249_s21  ;;  %p255_p2 = scmp.lt.s32.totalorder %s249_s21, %s249_s21 }
   0x9   :  { %p256_p3 = por %p255_p2, %p254_p1 }
   0xb   :  { %p257_p4 = pnand %p256_p3, %p250_p0 }
   0xd   :  { %260 = shalt.err (!%p257_p4)
}
   0xe   :  { %s324_s22 = smov [#allocation7]   ;;  %s38_s25 = sshll.u32 %s397_s2, 4  ;;  %s39_s25 = int_to_ptr.vmem [resolvable:$true] %s38_s25 }
   0xf   :  { %31 = dma.vmem_to_smem %s29_s17, 16, %s324_s22, [#allocation6]  }
  0x10   :  { %s261_s1 = scalar_lea.vmem %s39_s25, 16  ;;  %p266_p6 = scmp.lt.s32.totalorder %s39_s25, %s39_s25 }
  0x11   :  { %p262_p5 = scmp.ne.s32.totalorder %s39_s25, %s261_s1  ;;  %p267_p7 = scmp.lt.s32.totalorder %s261_s1, %s261_s1 }
  0x13   :  { %p268_p8 = por %p267_p7, %p266_p6 }
  0x15   :  { %p269_p9 = pnand %p268_p8, %p262_p5 }
  0x17   :  { %272 = shalt.err (!%p269_p9)
}
  0x18   :  { %s325_s0 = smov [#allocation8]   ;;  %s326_s26 = smov [#allocation10]  }
  0x19   :  { %41 = dma.vmem_to_smem %s39_s25, 16, %s325_s0, [#allocation9]  }
  0x1a   :  { %s48_s27 = sshll.u32 %s326_s26, 4  ;;  %s49_s27 = int_to_ptr.vmem [resolvable:$true] %s48_s27 }
  0x1b   :  { %s281_s28 = scalar_lea.vmem %s49_s27, 256  ;;  %p286_p11 = scmp.lt.s32.totalorder %s49_s27, %s49_s27 }
  0x1c   :  { %p282_p10 = scmp.ne.s32.totalorder %s49_s27, %s281_s28  ;;  %p287_p12 = scmp.lt.s32.totalorder %s281_s28, %s281_s28 }
  0x1e   :  { %p288_p13 = por %p287_p12, %p286_p11 }
  0x20   :  { %p289_p0 = pnand %p288_p13, %p282_p10 }
  0x22   :  { %292 = shalt.err (!%p289_p0)
}
  0x23   :  { %51 = dma.hbm_to_vmem [thread:$0]  %s398_s3, 256, %s49_s27, [#allocation3]  }
  0x24   :  { %313 = dma.done.wait [#allocation5], 16  }
  0x25   :  { %314 = vsyncadd [#allocation5], 4294967280 }
  0x26   :  { %315 = dma.done.wait [#allocation6], 16  }
  0x27   :  { %316 = vsyncadd [#allocation6], 4294967280 }
  0x28   :  { %317 = dma.done.wait [#allocation9], 16  }
  0x29   :  { %318 = vsyncadd [#allocation9], 4294967280 }
  0x2a   :  { %319 = dma.done.wait [#allocation3], 256  }
  0x2b   :  { %320 = vsyncadd [#allocation3], 4294967040 }
  0x2c   :  { %64 = sfence }
  0x2d   :  { %s67_s30 = sld [smem:[#allocation8]]  ;;  %v65_v0 = vld [vmem:[#allocation10] sm:$0xff]  ;;  %v66_v1 = vld [vmem:[#allocation10 + $0x8] sm:$0xff]  ;;  %s327_s21 = smov [#allocation11]  }
  0x2e   :  { %s74_s5 = sld [smem:[#allocation7]]  ;;  %s177_s22 = sshll.u32 %s327_s21, 4  ;;  %s178_s22 = int_to_ptr.vmem [resolvable:$true] %s177_s22 }
  0x2f   :  { %s191_s6 = sld [smem:[#allocation7 + $0x1]]  ;;  %s293_s23 = scalar_lea.vmem %s178_s22, 256 }
  0x30   :  { %s193_s7 = sld [smem:[#allocation7 + $0x2]]  ;;  %p294_p1 = scmp.ne.s32.totalorder %s178_s22, %s293_s23 }
  0x31   :  { %s195_s3 = sld [smem:[#allocation7 + $0x3]]  ;;  %p298_p2 = scmp.lt.s32.totalorder %s178_s22, %s178_s22 }
  0x32   :  { %s197_s8 = sld [smem:[#allocation7 + $0x4]]  ;;  %p299_p3 = scmp.lt.s32.totalorder %s293_s23, %s293_s23 }
  0x33   :  { %v68_v2 = vstv %s67_s30  ;;  %s365_s9 = sld [smem:[#allocation8 + $0x1]] }
  0x34   :  { %v69_v3 = vmul.f32 %v68_v2, %v65_v0  ;;  %v70_v4 = vmul.f32 %v68_v2, %v66_v1  ;;  %v75_v5 = vstv %s74_s5  ;;  %s199_s10 = sld [smem:[#allocation7 + $0x5]]  ;;  %p300_p4 = por %p299_p3, %p298_p2 }
  0x35   :  { %v87_v8 = vstv %s191_s6  ;;  %s367_s11 = sld [smem:[#allocation2]] }
  0x36   :  { %v76_v6 = vsub.f32 %v69_v3, %v75_v5  ;;  %v77_v7 = vsub.f32 %v70_v4, %v75_v5  ;;  %v88_v9 = vsub.f32 %v69_v3, %v87_v8  ;;  %v89_v10 = vsub.f32 %v70_v4, %v87_v8  ;;  %s201_s12 = sld [smem:[#allocation7 + $0x6]]  ;;  %p301_p5 = pnand %p300_p4, %p294_p1 }
  0x37   :  { %v99_v11 = vstv %s193_s7  ;;  %v111_v14 = vstv %s195_s3  ;;  %s369_s13 = sld [smem:[#allocation2 + $0x1]] }
  0x38   :  { %209 = vtanh.f32 %v76_v6  ;;  %v100_v12 = vsub.f32 %v69_v3, %v99_v11  ;;  %v101_v13 = vsub.f32 %v70_v4, %v99_v11  ;;  %v112_v15 = vsub.f32 %v69_v3, %v111_v14  ;;  %s203_s14 = sld [smem:[#allocation7 + $0x7]] }
  0x39   :  { %211 = vtanh.f32 %v77_v7  ;;  %v113_v16 = vsub.f32 %v70_v4, %v111_v14  ;;  %v123_v17 = vstv %s197_s8  ;;  %s371_s15 = sld [smem:[#allocation2 + $0x2]]  ;;  %v72_v31 = vstv %s365_s9 }
  0x3a   :  { %213 = vtanh.f32 %v88_v9  ;;  %v124_v18 = vsub.f32 %v69_v3, %v123_v17  ;;  %v125_v19 = vsub.f32 %v70_v4, %v123_v17  ;;  %v135_v20 = vstv %s199_s10  ;;  %s373_s16 = sld [smem:[#allocation2 + $0x3]] }
  0x3b   :  { %215 = vtanh.f32 %v89_v10  ;;  %v136_v21 = vsub.f32 %v69_v3, %v135_v20  ;;  %v137_v22 = vsub.f32 %v70_v4, %v135_v20  ;;  %v80_v26 = vstv %s367_s11  ;;  %s376_s17 = sld [smem:[#allocation2 + $0x4]] }
  0x3c   :  { %217 = vtanh.f32 %v100_v12  ;;  %v147_v23 = vstv %s201_s12  ;;  %s380_s18 = sld [smem:[#allocation2 + $0x5]] }
  0x3d   :  { %219 = vtanh.f32 %v101_v13  ;;  %v148_v24 = vsub.f32 %v69_v3, %v147_v23  ;;  %v149_v25 = vsub.f32 %v70_v4, %v147_v23  ;;  %v92_v32 = vstv %s369_s13  ;;  %s383_s19 = sld [smem:[#allocation2 + $0x6]] }
  0x3e   :  { %221 = vtanh.f32 %v112_v15  ;;  %v159_v27 = vstv %s203_s14  ;;  %s386_s20 = sld [smem:[#allocation2 + $0x7]] }
  0x3f   :  { %223 = vtanh.f32 %v113_v16  ;;  %v160_v28 = vsub.f32 %v69_v3, %v159_v27  ;;  %v161_v29 = vsub.f32 %v70_v4, %v159_v27  ;;  %v104_v36 = vstv %s371_s15 }
  0x40   :  { %225 = vtanh.f32 %v124_v18  ;;  %v116_v42 = vstv %s373_s16 }
  0x41   :  { %227 = vtanh.f32 %v125_v19  ;;  %v128_v49 = vstv %s376_s17 }
  0x42   :  { %229 = vtanh.f32 %v136_v21  ;;  %v140_v56 = vstv %s380_s18 }
  0x43   :  { %231 = vtanh.f32 %v137_v22  ;;  %v152_v63 = vstv %s383_s19 }
  0x44   :  { %233 = vtanh.f32 %v148_v24  ;;  %v164_v6 = vstv %s386_s20 }
  0x45   :  { %v210_v30 = vpop.eup %209  ;;  %235 = vtanh.f32 %v149_v25 }
  0x46   :  { %v212_v33 = vpop.eup %211  ;;  %v81_v34 = vmul.f32 %v210_v30, %v80_v26  ;;  %237 = vtanh.f32 %v160_v28 }
  0x47   :  { %v214_v35 = vpop.eup %213  ;;  %v82_v37 = vmul.f32 %v212_v33, %v80_v26  ;;  %239 = vtanh.f32 %v161_v29 }
  0x48   :  { %v216_v38 = vpop.eup %215  ;;  %v83_v39 = vadd.f32 %v81_v34, %v72_v31  ;;  %v93_v40 = vmul.f32 %v214_v35, %v92_v32 }
  0x49   :  { %v218_v41 = vpop.eup %217  ;;  %v84_v43 = vadd.f32 %v82_v37, %v72_v31  ;;  %v94_v44 = vmul.f32 %v216_v38, %v92_v32 }
  0x4a   :  { %v220_v45 = vpop.eup %219  ;;  %v95_v46 = vadd.f32 %v93_v40, %v83_v39  ;;  %v105_v47 = vmul.f32 %v218_v41, %v104_v36 }
  0x4b   :  { %v222_v48 = vpop.eup %221  ;;  %v96_v50 = vadd.f32 %v94_v44, %v84_v43  ;;  %v106_v51 = vmul.f32 %v220_v45, %v104_v36 }
  0x4c   :  { %v224_v52 = vpop.eup %223  ;;  %v107_v53 = vadd.f32 %v105_v47, %v95_v46  ;;  %v117_v54 = vmul.f32 %v222_v48, %v116_v42 }
  0x4d   :  { %v226_v55 = vpop.eup %225  ;;  %v108_v57 = vadd.f32 %v106_v51, %v96_v50  ;;  %v118_v58 = vmul.f32 %v224_v52, %v116_v42 }
  0x4e   :  { %v228_v59 = vpop.eup %227  ;;  %v119_v60 = vadd.f32 %v117_v54, %v107_v53  ;;  %v129_v61 = vmul.f32 %v226_v55, %v128_v49 }
  0x4f   :  { %v230_v62 = vpop.eup %229  ;;  %v120_v0 = vadd.f32 %v118_v58, %v108_v57  ;;  %v130_v1 = vmul.f32 %v228_v59, %v128_v49 }
  0x50   :  { %v232_v2 = vpop.eup %231  ;;  %v131_v3 = vadd.f32 %v129_v61, %v119_v60  ;;  %v141_v4 = vmul.f32 %v230_v62, %v140_v56 }
  0x51   :  { %v234_v5 = vpop.eup %233  ;;  %v132_v7 = vadd.f32 %v130_v1, %v120_v0  ;;  %v142_v8 = vmul.f32 %v232_v2, %v140_v56 }
  0x52   :  { %v236_v9 = vpop.eup %235  ;;  %v143_v10 = vadd.f32 %v141_v4, %v131_v3  ;;  %v153_v11 = vmul.f32 %v234_v5, %v152_v63 }
  0x53   :  { %v238_v12 = vpop.eup %237  ;;  %v144_v13 = vadd.f32 %v142_v8, %v132_v7  ;;  %v154_v14 = vmul.f32 %v236_v9, %v152_v63 }
  0x54   :  { %v240_v15 = vpop.eup %239  ;;  %v155_v16 = vadd.f32 %v153_v11, %v143_v10  ;;  %v165_v17 = vmul.f32 %v238_v12, %v164_v6 }
  0x55   :  { %v156_v18 = vadd.f32 %v154_v14, %v144_v13  ;;  %v166_v19 = vmul.f32 %v240_v15, %v164_v6 }
  0x56   :  { %v167_v20 = vadd.f32 %v165_v17, %v155_v16 }
  0x57   :  { %v168_v21 = vadd.f32 %v166_v19, %v156_v18 }
  0x58   :  { %169 = vst [vmem:[#allocation11] sm:$0xff] %v167_v20 }
  0x59   :  { %170 = vst [vmem:[#allocation11 + $0x8] sm:$0xff] %v168_v21 }
  0x5a   :  { %304 = shalt.err (!%p301_p5)
}
  0x5b   :  { %180 = dma.vmem_to_hbm [thread:$0]  %s178_s22, 256, %s399_s4, [#allocation4]  }
  0x5c   :  { %321 = dma.done.wait [#allocation4], 256  }
  0x5d   :  { %322 = vsyncadd [#allocation4], 4294967040 }
  0x5e   :  { %184 = vsyncpa [#allocation3], 1 }
  0x5f   :  { %185 = vsyncpa [#allocation4], 1 }
  0x60   :  { %186 = vsyncpa [#allocation5], 1 }
  0x61   :  { %187 = vsyncpa [#allocation6], 1 }
  0x62   :  { %188 = vsyncpa [#allocation9], 1 }

</bundles_post_ra>
